<compile_context>
chip_gen: v7x
topology: tpu7x:2x2x1
jax: 0.10.0
libtpu: 0.0.40
codegen_flags: <defaults>
</compile_context>

<pallas_src>
import jax
import jax.numpy as jnp
from jax.experimental import pallas as pl
from jax.experimental.pallas import tpu as pltpu


def _ca_layer_kernel(x_ref, w1_ref, b1_ref, w2_ref, b2_ref, o_ref):
    """Fused CALayer for one image.

    x_ref : (1, C, HW)  activation, spatial lane-dense
    w1_ref: (Cr, C)     Conv2d(C, Cr, 1) weight (PyTorch (out,in) layout, 1x1 squeezed)
    b1_ref: (Cr, 1)
    w2_ref: (C, Cr)     Conv2d(Cr, C, 1) weight
    b2_ref: (C, 1)
    o_ref : (1, C, HW)
    """
    x = x_ref[0].astype(jnp.float32)                       # (C, HW)
    # Global average pool over the spatial (lane) axis.
    y = jnp.mean(x, axis=-1, keepdims=True)                # (C, 1)
    # 1x1 conv (C -> Cr) + ReLU, on column vectors (no relayout of pooled vec).
    h = jnp.dot(w1_ref[...], y, preferred_element_type=jnp.float32) + b1_ref[...]
    h = jnp.maximum(h, 0.0)                                # (Cr, 1)
    # 1x1 conv (Cr -> C) + sigmoid.
    s = jnp.dot(w2_ref[...], h, preferred_element_type=jnp.float32) + b2_ref[...]
    s = jax.nn.sigmoid(s)                                  # (C, 1)
    # Channel-wise gating: lane-broadcast of the per-channel scale.
    o_ref[0] = (x * s).astype(o_ref.dtype)


def ca_layer(x, w1, b1, w2, b2):
    """x: (N, C, H, W) NCHW (PyTorch layout). Returns (N, C, H, W)."""
    N, C, H, W = x.shape
    HW = H * W
    Cr = w1.shape[0]
    xf = x.reshape(N, C, HW)  # contiguous -> free reshape, no data movement

    # TODO(synk): for images where a full (C, H*W) slab does not fit VMEM,
    # switch to a two-pass spatially tiled variant (sum pass + scale pass).
    itemsize = jnp.dtype(x.dtype).itemsize
    block_bytes = C * HW * itemsize
    vmem_limit = int(min(max(4 * block_bytes + (2 << 20), 8 << 20), 100 << 20))

    out = pl.pallas_call(
        _ca_layer_kernel,
        out_shape=jax.ShapeDtypeStruct((N, C, HW), x.dtype),
        grid=(N,),
        in_specs=[
            pl.BlockSpec((1, C, HW), lambda n: (n, 0, 0)),
            pl.BlockSpec((Cr, C), lambda n: (0, 0)),
            pl.BlockSpec((Cr, 1), lambda n: (0, 0)),
            pl.BlockSpec((C, Cr), lambda n: (0, 0)),
            pl.BlockSpec((C, 1), lambda n: (0, 0)),
        ],
        out_specs=pl.BlockSpec((1, C, HW), lambda n: (n, 0, 0)),
        compiler_params=pltpu.CompilerParams(
            dimension_semantics=("parallel",),
            vmem_limit_bytes=vmem_limit,
        ),
    )(xf, w1, b1, w2, b2)
    return out.reshape(N, C, H, W)


def reference_ca_layer(x, w1, b1, w2, b2):
    """Pure-JAX reference mirroring the PyTorch CALayer forward."""
    y = jnp.mean(x, axis=(2, 3))                           # (N, C)
    h = jnp.maximum(y @ w1.T + b1[:, 0], 0.0)              # (N, Cr)
    s = jax.nn.sigmoid(h @ w2.T + b2[:, 0])                # (N, C)
    return x * s[:, :, None, None]


if __name__ == "__main__":
    N, C, H, W = 2, 32, 16, 16          # channel >= reduction so C//r >= 1
    reduction = 16
    Cr = C // reduction                 # = 2

    key = jax.random.PRNGKey(0)
    k = jax.random.split(key, 5)
    f32 = jnp.float32

    x = jax.random.normal(k[0], (N, C, H, W), f32)
    # PyTorch Conv2d weight layouts with the trailing 1x1 squeezed.
    w1 = 0.1 * jax.random.normal(k[1], (Cr, C), f32)
    b1 = 0.1 * jax.random.normal(k[2], (Cr, 1), f32)
    w2 = 0.1 * jax.random.normal(k[3], (C, Cr), f32)
    b2 = 0.1 * jax.random.normal(k[4], (C, 1), f32)

    out = ca_layer(x, w1, b1, w2, b2)
    out = jax.block_until_ready(out)

    ref = reference_ca_layer(x, w1, b1, w2, b2)
    err = float(jnp.max(jnp.abs(out - ref)))
    if err > 1e-5:
        raise AssertionError(f"Pallas CALayer mismatch vs reference: max abs err {err}")

    print("KERNEL_OK")
</pallas_src>

<mosaic_0001>
module attributes {stable_mosaic.version = 11 : i64} {
  func.func @_ca_layer_kernel(%arg0: i32, %arg1: memref<1x32x256xf32, #tpu.memory_space<vmem>>, %arg2: memref<2x32xf32, #tpu.memory_space<vmem>>, %arg3: memref<2x1xf32, #tpu.memory_space<vmem>>, %arg4: memref<32x2xf32, #tpu.memory_space<vmem>>, %arg5: memref<32x1xf32, #tpu.memory_space<vmem>>, %arg6: memref<1x32x256xf32, #tpu.memory_space<vmem>>) attributes {dimension_semantics = [#tpu.dimension_semantics<parallel>], iteration_bounds = array<i64: 2>, scalar_prefetch = 0 : i64, scratch_operands = 0 : i64, tpu.core_type = #tpu.core_type<tc>, window_params = [{transform_indices = @transform_0, window_bounds = array<i64: 1, 32, 256>}, {pipeline_mode = #tpu.pipeline_mode<synchronous>, transform_indices = @transform_1, window_bounds = array<i64: 2, 32>}, {pipeline_mode = #tpu.pipeline_mode<synchronous>, transform_indices = @transform_2, window_bounds = array<i64: 2, 1>}, {pipeline_mode = #tpu.pipeline_mode<synchronous>, transform_indices = @transform_3, window_bounds = array<i64: 32, 2>}, {pipeline_mode = #tpu.pipeline_mode<synchronous>, transform_indices = @transform_4, window_bounds = array<i64: 32, 1>}, {transform_indices = @transform_5, window_bounds = array<i64: 1, 32, 256>}]} {
    %c0 = arith.constant 0 : index
    %c0_0 = arith.constant 0 : index
    %c0_1 = arith.constant 0 : index
    %0 = vector.load %arg1[%c0, %c0_0, %c0_1] : memref<1x32x256xf32, #tpu.memory_space<vmem>>, vector<1x32x256xf32>
    %1 = vector.shape_cast %0 : vector<1x32x256xf32> to vector<32x256xf32>
    %cst = arith.constant dense<0.000000e+00> : vector<32xf32>
    %2 = vector.multi_reduction <add>, %1, %cst [1] : vector<32x256xf32> to vector<32xf32>
    %3 = vector.shape_cast %2 : vector<32xf32> to vector<32x1xf32>
    %cst_2 = arith.constant 2.560000e+02 : f32
    %4 = vector.broadcast %cst_2 : f32 to vector<32x1xf32>
    %5 = arith.divf %3, %4 : vector<32x1xf32>
    %c0_3 = arith.constant 0 : index
    %c0_4 = arith.constant 0 : index
    %6 = vector.load %arg2[%c0_3, %c0_4] : memref<2x32xf32, #tpu.memory_space<vmem>>, vector<2x32xf32>
    %cst_5 = arith.constant dense<0.000000e+00> : vector<2x1xf32>
    %7 = tpu.matmul %6, %5, %cst_5 {dimension_numbers = #tpu.dot_dimension_numbers<[1], [0], [0], [1], [0, 0, 1, 1], [], []>} : vector<2x32xf32>, vector<32x1xf32>, vector<2x1xf32> -> vector<2x1xf32>
    %c0_6 = arith.constant 0 : index
    %c0_7 = arith.constant 0 : index
    %8 = vector.load %arg3[%c0_6, %c0_7] : memref<2x1xf32, #tpu.memory_space<vmem>>, vector<2x1xf32>
    %9 = arith.addf %7, %8 : vector<2x1xf32>
    %cst_8 = arith.constant 0.000000e+00 : f32
    %10 = vector.broadcast %cst_8 : f32 to vector<2x1xf32>
    %11 = arith.maximumf %9, %10 : vector<2x1xf32>
    %c0_9 = arith.constant 0 : index
    %c0_10 = arith.constant 0 : index
    %12 = vector.load %arg4[%c0_9, %c0_10] : memref<32x2xf32, #tpu.memory_space<vmem>>, vector<32x2xf32>
    %cst_11 = arith.constant dense<0.000000e+00> : vector<32x1xf32>
    %13 = tpu.matmul %12, %11, %cst_11 {dimension_numbers = #tpu.dot_dimension_numbers<[1], [0], [0], [1], [0, 0, 1, 1], [], []>} : vector<32x2xf32>, vector<2x1xf32>, vector<32x1xf32> -> vector<32x1xf32>
    %c0_12 = arith.constant 0 : index
    %c0_13 = arith.constant 0 : index
    %14 = vector.load %arg5[%c0_12, %c0_13] : memref<32x1xf32, #tpu.memory_space<vmem>>, vector<32x1xf32>
    %15 = arith.addf %13, %14 : vector<32x1xf32>
    %16 = arith.negf %15 : vector<32x1xf32>
    %17 = math.exp %16 : vector<32x1xf32>
    %cst_14 = arith.constant 1.000000e+00 : f32
    %18 = vector.broadcast %cst_14 : f32 to vector<32x1xf32>
    %19 = arith.addf %18, %17 : vector<32x1xf32>
    %20 = arith.divf %18, %19 : vector<32x1xf32>
    %21 = vector.broadcast %20 : vector<32x1xf32> to vector<32x256xf32>
    %22 = arith.mulf %1, %21 : vector<32x256xf32>
    %c0_15 = arith.constant 0 : index
    %c0_16 = arith.constant 0 : index
    %c0_17 = arith.constant 0 : index
    %23 = vector.load %arg6[%c0_15, %c0_16, %c0_17] : memref<1x32x256xf32, #tpu.memory_space<vmem>>, vector<1x32x256xf32>
    %24 = vector.shape_cast %23 : vector<1x32x256xf32> to vector<32x256xf32>
    %25 = vector.shape_cast %22 : vector<32x256xf32> to vector<1x32x256xf32>
    tpu.vector_store %arg6[%c0_15, %c0_16, %c0_17], %25 {strides = array<i32>} : memref<1x32x256xf32, #tpu.memory_space<vmem>>, vector<1x32x256xf32>,
    return
  }
  func.func @transform_0(%arg0: i32) -> (i32, i32, i32) {
    %c0_i32 = arith.constant 0 : i32
    %c0_i32_0 = arith.constant 0 : i32
    %c0_i32_1 = arith.constant 0 : i32
    return %arg0, %c0_i32, %c0_i32_0 : i32, i32, i32
  }
  func.func @transform_1(%arg0: i32) -> (i32, i32) {
    %c0_i32 = arith.constant 0 : i32
    %c0_i32_0 = arith.constant 0 : i32
    %c0_i32_1 = arith.constant 0 : i32
    return %c0_i32, %c0_i32_0 : i32, i32
  }
  func.func @transform_2(%arg0: i32) -> (i32, i32) {
    %c0_i32 = arith.constant 0 : i32
    %c0_i32_0 = arith.constant 0 : i32
    %c0_i32_1 = arith.constant 0 : i32
    return %c0_i32, %c0_i32_0 : i32, i32
  }
  func.func @transform_3(%arg0: i32) -> (i32, i32) {
    %c0_i32 = arith.constant 0 : i32
    %c0_i32_0 = arith.constant 0 : i32
    %c0_i32_1 = arith.constant 0 : i32
    return %c0_i32, %c0_i32_0 : i32, i32
  }
  func.func @transform_4(%arg0: i32) -> (i32, i32) {
    %c0_i32 = arith.constant 0 : i32
    %c0_i32_0 = arith.constant 0 : i32
    %c0_i32_1 = arith.constant 0 : i32
    return %c0_i32, %c0_i32_0 : i32, i32
  }
  func.func @transform_5(%arg0: i32) -> (i32, i32, i32) {
    %c0_i32 = arith.constant 0 : i32
    %c0_i32_0 = arith.constant 0 : i32
    %c0_i32_1 = arith.constant 0 : i32
    return %arg0, %c0_i32, %c0_i32_0 : i32, i32, i32
  }
}

</mosaic_0001>

<bundles_post_ra>
// kernel: tpu_custom_call.1
= control target key start
LH: loop header
LB: loop body
LE: loop exit
PB: predicated region body
PF: predicated region fallthrough
CT: control target
= control target key end

     0   :  { %10 = vsyncpa [#allocation3], 0  ;;  %s1101_s0 = inlined_call_operand.hbm [shape: f32[2,32,256], index: 0, kind: input, shape index: {}]   ;;  %s1102_s1 = inlined_call_operand.vmem [shape: f32[2,32], index: 1, kind: input, shape index: {}]   ;;  %s1103_s2 = inlined_call_operand.vmem [shape: f32[2,1], index: 2, kind: input, shape index: {}]   ;;  %s1104_s3 = inlined_call_operand.vmem [shape: f32[32,2], index: 3, kind: input, shape index: {}]   ;;  %s1105_s4 = inlined_call_operand.vmem [shape: f32[32,1], index: 4, kind: input, shape index: {}]   ;;  %s1106_s5 = inlined_call_operand.hbm [shape: f32[2,32,256], index: 5, kind: output, shape index: {}]  }
   0x1   :  { %12 = vsyncpa [#allocation3 + $0x1], 0 }
   0x2   :  { %13 = vsyncpa [#allocation4], 0 }
   0x3   :  { %15 = vsyncpa [#allocation4 + $0x1], 0  ;;  %s873_s18 = smov 0   ;;  %s875_s19 = smov 0  }
   0x4   :  { %s877_s20 = smov 0   ;;  %s879_s21 = smov 0  }
   0x5 LB: > { %s894_s22 = sadd.s32 4294967295, %s831_s21   ;;  %s602_s23 = sadd.s32 4294967294, %s831_s21   ;;  %s831_s21 = sphi %s879_s21, %s1119_s21   ;;  %s827_s20 = sphi %s877_s20, %s1118_s20   ;;  %s823_s19 = sphi %s875_s19, %s1117_s19   ;;  %s819_s18 = sphi %s873_s18, %s1116_s18  }
   0x6   : > { %s898_s24 = sadd.s32 1, %s831_s21   ;;  %s28_s25 = sadd.s32 1, %s827_s20 }
   0x7   : > { %s25_s26 = ssub.s32 %s831_s21, %s898_s24  ;;  %p35_p0 = scmp.ne.s32.totalorder %s827_s20, %s823_s19 }
   0x8   : > { %p26_p1 = scmp.eq.s32.totalorder %s25_s26, 0  ;;  %p36_p2 = scmp.eq.s32.totalorder %s831_s21, 0 }
   0x9   : > { %p41_p3 = scmp.ne.s32.totalorder %s823_s19, %s819_s18  ;;  %p42_p4 = scmp.eq.s32.totalorder %s894_s22, 0 }
   0xa   : > { %s910_s27 = scalar_select %p26_p1, %s827_s20, %s28_s25  }
   0xb   : > { %p912_p5 = por %p36_p2, %p35_p0  ;;  %p916_p6 = por %p42_p4, %p41_p3 }
   0xc   : > { %p149_p7 = scmp.eq.s32.totalorder %s894_s22, 1  ;;  %p155_p8 = scmp.eq.s32.totalorder %s602_s23, 1 }
   0xd   : > { %p675_p10 = scmp.lt.s32.totalorder %s831_s21, 2  ;;  %s187_s7 = sand.u32 1, %s827_s20  }
   0xe   : > { %p923_p11 = por %p149_p7, %p35_p0  ;;  %p927_p12 = por %p155_p8, %p41_p3 }
   0xf   : > { %s626_s8 = sshll.u32 %s831_s21, 10  ;;  %s605_s9 = sshll.u32 %s187_s7, 6 }
  0x10   : > { %s1110_s30 = scalar_select %p923_p11, 1, 0 }
  0x11   : > { %s1111_s6 = scalar_select %p927_p12, 1, 0 }
  0x12   : > { %s936_s12 = scalar_lea.hbm %s1101_s0, %s626_s8  ;;  %s191_s13 = scalar_lea.vmem [#allocation2], %s605_s9 }
  0x13   : > { %s198_s14 = sshll.u32 %s191_s13, 4  ;;  %p940_p13 = pnand %p675_p10, %p912_p5  ;;  %s944_s14 = int_to_ptr.vmem [resolvable:$true] %s198_s14 }
  0x14   : > { %s946_s16 = scalar_lea.sflag [#allocation3], %s187_s7  ;;  %s735_s17 = scalar_lea.hbm %s936_s12, 1024 }
  0x15   : > { %p736_p0 = scmp.ne.s32.totalorder %s936_s12, %s735_s17  ;;  %p737_p1 = pneg %p940_p13 }
  0x16   : > { %s740_s26 = scalar_lea.hbm %s1101_s0, 2048  ;;  %p741_p4 = scmp.lt.u32.totalorder %s936_s12, %s1101_s0 }
  0x17   : > { %p738_p2 = pnand %p737_p1, %p736_p0  ;;  %p742_p5 = scmp.lt.u32.totalorder %s740_s26, %s735_s17 }
  0x18   : > { %p744_p8 = scmp.lt.u32.totalorder %s735_s17, %s936_s12 }
  0x19   : > { %p739_p3 = pneg %p738_p2  ;;  %p743_p7 = por %p742_p5, %p741_p4 }
  0x1b   : > { %p745_p10 = por %p744_p8, %p743_p7 }
  0x1d   : > { %p746_p9 = pnand %p745_p10, %p739_p3 }
  0x1f   : > { %749 = shalt.err (!%p746_p9)
}
  0x20   : > { %s750_s7 = scalar_lea.vmem %s944_s14, 1024  ;;  %s833_s9 = smov [#allocation2]  }
  0x21   : > { %p751_p0 = scmp.ne.s32.totalorder %s944_s14, %s750_s7  ;;  %s755_s10 = sshll.u32 %s833_s9, 4  ;;  %s756_s10 = int_to_ptr.vmem [resolvable:$false] %s755_s10 }
  0x22   : > { %s757_s11 = scalar_lea.vmem %s756_s10, 2048  ;;  %p758_p11 = scmp.lt.s32.totalorder %s944_s14, %s756_s10 }
  0x23   : > { %p753_p2 = pnand %p751_p0, %p737_p1  ;;  %p759_p4 = scmp.lt.s32.totalorder %s757_s11, %s750_s7 }
  0x25   : > { %p754_p12 = pneg %p753_p2  ;;  %p760_p5 = por %p759_p4, %p758_p11 }
  0x27   : > { %p761_p7 = pnand %p760_p5, %p754_p12 }
  0x29   : > { %764 = shalt.err (!%p761_p7)
}
  0x2a   : > { %s834_s13 = smov 256   ;;  %s835_s17 = smov 16  }
  0x2b   : > { %670 = dma.hbm_to_vmem [thread:$0]  (!%p940_p13), %s936_s12, 1024, %s944_s14, %s946_s16, %s834_s13, %s834_s13, %s835_s17  }
  0x2c   : > { %p608_p9 = scmp.ge.s32.totalorder %s831_s21, 1  ;;  %p206_p1 = scmp.lt.s32.totalorder %s831_s21, 3 }
  0x2e   : > { %p207_p3 = pnand %p608_p9, %p206_p1 }
  0x2f   : > { %s977_s23 = sand.u32 (!%p207_p3), 1, %s823_s19  }
  0x30   : > { %210 = sbr.rel (%p207_p3) target bundleno = 829 (0x33d), region = 40  ;;  %s609_s25 = sshll.u32 (!%p207_p3), %s977_s23, 6 }
  0x31   : > { %s213_s26 = scalar_lea.sflag (!%p207_p3), [#allocation3], %s977_s23  ;;  %s216_s28 = scalar_lea.vmem (!%p207_p3), [#allocation2], %s609_s25 }
  0x37   : > { %810 = dma.done.wait (%p916_p6), %s213_s26, 1024  }
  0x38   : > { %812 = vsyncadd (%p916_p6), %s213_s26, 4294966272  ;;  %v987_v0 = vld [vmem:[%s216_s28 + $0x20] sm:$0xff]  ;;  %v989_v1 = vld [vmem:[%s216_s28 + $0x28] sm:$0xff]  ;;  %v836_v12 = vmov 0.0|0.0   ;;  %vm837_vm0 = vmmov 0   ;;  %v838_v13 = vmov 0.0  }
  0x39   : > { %v991_v2 = vld [vmem:[%s216_s28] sm:$0xff]  ;;  %v257_v3 = vadd.f32 %v989_v1, %v987_v0  ;;  %v995_v4 = vld [vmem:[%s216_s28 + $0x8] sm:$0xff]  ;;  %v997_v5 = vld [vmem:[%s216_s28 + $0x30] sm:$0xff]  ;;  %657 = vmatprep.subr.bf16.mxu0 %v836_v12  ;;  %646 = vmatprep.mubr.msk.f32.mxu0 %vm837_vm0, %v838_v13  ;;  %vm270_vm1 = vcmask 261120   ;;  %vm353_vm2 = vcmask 15360   ;;  %vm366_vm3 = vcmask 1041408  }
  0x3a   : > { %v999_v6 = vld [vmem:[%s216_s28 + $0x38] sm:$0xff]  ;;  %v251_v7 = vadd.f32 %v995_v4, %v991_v2  ;;  %v1003_v8 = vld [vmem:[%s216_s28 + $0x10] sm:$0xff]  ;;  %v268_v24 = vld [vmem:[%s1102_s1] sm:$0x3]  ;;  %v839_v34 = vmov 0   ;;  %s242_s7 = scalar_lea.vmem [#allocation5], %s609_s25 }
  0x3b   : > { %v1005_v9 = vld [vmem:[%s216_s28 + $0x18] sm:$0xff]  ;;  %258 = vadd.xlane.f32.xlu1 %v257_v3  ;;  %v260_v10 = vadd.f32 %v999_v6, %v997_v5  ;;  %v345_v25 = vld [vmem:[%s1104_s3] sm:$0xff]  ;;  %v346_v31 = vld [vmem:[%s1104_s3 + $0x8] sm:$0xff]  ;;  %717 = vset.pattern.permute.xlu0 %v839_v34  ;;  %s529_s9 = sshll.u32 %s242_s7, 4  ;;  %s627_s10 = sshll.u32 %s894_s22, 10  ;;  %s1050_s9 = int_to_ptr.vmem [resolvable:$true] %s529_s9 }
  0x3c   : > { %252 = vadd.xlane.f32.xlu0 %v251_v7  ;;  %v254_v11 = vadd.f32 %v1005_v9, %v1003_v8  ;;  %651 = vmatprep.mubr.msk.f32.mxu1 %vm353_vm2, %v345_v25  ;;  %v269_v26 = vld [vmem:[%s1103_s2] sm:$0x3]  ;;  %v347_v32 = vld [vmem:[%s1104_s3 + $0x10] sm:$0xff]  ;;  %v348_v33 = vld [vmem:[%s1104_s3 + $0x18] sm:$0xff]  ;;  %s1055_s13 = scalar_lea.hbm %s1106_s5, %s627_s10  ;;  %s516_s22 = scalar_lea.sflag [#allocation4], %s977_s23 }
  0x3d   : > { %718 = vset.pattern.permute.xlu1 %v839_v34  ;;  %v350_v35 = vld [vmem:[%s1105_s4 + $0x8] sm:$0xff]  ;;  %v349_v36 = vld [vmem:[%s1105_s4] sm:$0xff]  ;;  %v352_v41 = vld [vmem:[%s1105_s4 + $0x18] sm:$0xff]  ;;  %s765_s17 = scalar_lea.vmem %s1050_s9, 1024  ;;  %p1113_p11 = scmp.ne.s32.totalorder %s1110_s30, 0 }
  0x3e   : > { %v351_v43 = vld [vmem:[%s1105_s4 + $0x10] sm:$0xff]  ;;  %p766_p6 = scmp.ne.s32.totalorder %s1050_s9, %s765_s17  ;;  %s840_s26 = smov [#allocation5]  }
  0x3f   : > { %261 = vadd.xlane.f32.xlu1 %v260_v10  ;;  %s769_s28 = sshll.u32 %s840_s26, 4  ;;  %s770_s28 = int_to_ptr.vmem [resolvable:$false] %s769_s28 }
  0x40   : > { %255 = vadd.xlane.f32.xlu0 %v254_v11  ;;  %p767_p12 = pnand %p766_p6, %p1113_p11  ;;  %s771_s29 = scalar_lea.vmem %s770_s28, 2048 }
  0x41   : > { %p772_p8 = scmp.lt.s32.totalorder %s1050_s9, %s770_s28  ;;  %p773_p10 = scmp.lt.s32.totalorder %s771_s29, %s765_s17 }
  0x42   : > { %p768_p13 = pneg %p767_p12 }
  0x43   : > { %p774_p0 = por %p773_p10, %p772_p8 }
  0x45   : > { %p775_p2 = pnand %p774_p0, %p768_p13 }
  0xc8   : > { %v259_v14 = vpop.xlane.xlu1 %258 }
  0xc9   : > { %v253_v15 = vpop.xlane.xlu0 %252  ;;  %v266_v20 = vmul.f32 0.00390625, %v259_v14 }
  0xca   : > { %v264_v18 = vmul.f32 0.00390625, %v253_v15 }
  0xcc   : > { %v262_v16 = vpop.xlane.xlu1 %261 }
  0xcd   : > { %v256_v17 = vpop.xlane.xlu0 %255  ;;  %v267_v21 = vmul.f32 0.00390625, %v262_v16 }
  0xce   : > { %v265_v19 = vmul.f32 0.00390625, %v256_v17 }
  0xcf   : > { %v661_v23 = vpack.c.bf16 %v267_v21, %v266_v20 }
  0xd0   : > { %v658_v22 = vpack.c.bf16 %v265_v19, %v264_v18 }
  0xd2   : > { %659 = vmatpush3.bf16.msra.mxu0 %v658_v22 }
  0xd3   : > { %660 = vmatprep.subr.bf16.mxu0 %v836_v12 }
  0xd6   : > { %662 = vmatpush3.bf16.msra.mxu0 %v661_v23 }
  0xd9   : > { %647 = vmatmul.mubr.msk.f32.vlgmr.msra.gmra.mrb[0].mxu0 %vm270_vm1, %v268_v24 }
 0x1ac   : > { %v340_v27 = vpop.f32.mrb[0].mxu0 }
 0x1ad   : > { %v341_v28 = vadd.f32 %v340_v27, %v269_v26  ;;  %v648_v29 = vpop.f32.mrb[1].mxu0 }
 0x1af   : > { %v344_v30 = vmax.f32 %v341_v28, 0.0 }
 0x1b1   : > { %649 = vmatprep.subr.msk.mxu1 %vm366_vm3, %v344_v30 }
 0x1b2   : > { %650 = vmatpush3.msk.msra.mxu1 %vm366_vm3, %v344_v30 }
 0x1b3   : > { %652 = vmatmul.mubr.msk.f32.vlgmr.msra.gmra.mrb[0].mxu1 %vm353_vm2, %v346_v31 }
 0x1b4   : > { %654 = vmatprep.mubr.msk.f32.mxu1 %vm353_vm2, %v347_v32 }
 0x1b7   : > { %655 = vmatmul.mubr.msk.f32.gmra.mrb[2].mxu1 %vm353_vm2, %v348_v33 }
 0x286   : > { %v653_v37 = vpop.f32.mrb[0].mxu1 }
 0x287   : > { %v442_v38 = vadd.f32 %v653_v37, %v350_v35  ;;  %v436_v39 = vpop.f32.mrb[1].mxu1 }
 0x288   : > { %v437_v40 = vadd.f32 %v436_v39, %v349_v36 }
 0x289   : > { %v618_v42 = vmul.f32 -1.442695, %v442_v38 }
 0x28a   : > { %v617_v44 = vmul.f32 -1.442695, %v437_v40  ;;  %v656_v45 = vpop.f32.mrb[2].mxu1 }
 0x28b   : > { %719 = vpow2.f32 %v618_v42  ;;  %v452_v46 = vadd.f32 %v656_v45, %v352_v41  ;;  %v446_v47 = vpop.f32.mrb[3].mxu1 }
 0x28c   : > { %721 = vpow2.f32 %v617_v44  ;;  %v447_v48 = vadd.f32 %v446_v47, %v351_v43 }
 0x28d   : > { %v620_v49 = vmul.f32 -1.442695, %v452_v46 }
 0x28e   : > { %v619_v50 = vmul.f32 -1.442695, %v447_v48 }
 0x28f   : > { %723 = vpow2.f32 %v620_v49 }
 0x290   : > { %725 = vpow2.f32 %v619_v50 }
 0x295   : > { %v720_v51 = vpop.eup %719 }
 0x296   : > { %v722_v52 = vpop.eup %721  ;;  %v468_v53 = vadd.f32 1.0, %v720_v51 }
 0x297   : > { %v467_v54 = vadd.f32 1.0, %v722_v52 }
 0x298   : > { %727 = vrcp.f32 %v468_v53 }
 0x299   : > { %v724_v55 = vpop.eup %723  ;;  %729 = vrcp.f32 %v467_v54 }
 0x29a   : > { %v726_v56 = vpop.eup %725  ;;  %v470_v58 = vadd.f32 1.0, %v724_v55 }
 0x29b   : > { %v469_v57 = vadd.f32 1.0, %v726_v56 }
 0x29d   : > { %731 = vrcp.f32 %v469_v57 }
 0x29e   : > { %733 = vrcp.f32 %v470_v58 }
 0x2a2   : > { %v728_v59 = vpop.eup %727 }
 0x2a3   : > { %v730_v60 = vpop.eup %729  ;;  %486 = vperm.xlu1 %718, %v728_v59  }
 0x2a4   : > { %481 = vperm.xlu0 %717, %v730_v60  }
 0x2a7   : > { %v732_v61 = vpop.eup %731 }
 0x2a8   : > { %491 = vperm.xlu1 %718, %v732_v61   ;;  %v734_v62 = vpop.eup %733 }
 0x2ac   : > { %496 = vperm.xlu1 %718, %v734_v62  }
 0x322   : > { %v487_v63 = vpop.permute.xlu1 %486 }
 0x323   : > { %v501_v3 = vmul.f32 %v487_v63, %v1003_v8  ;;  %v502_v7 = vmul.f32 %v487_v63, %v1005_v9  ;;  %v482_v10 = vpop.permute.xlu0 %481 }
 0x324   : > { %v499_v11 = vmul.f32 %v482_v10, %v991_v2  ;;  %v500_v12 = vmul.f32 %v482_v10, %v995_v4 }
 0x325   : > { %509 = vst [vmem:[%s242_s7 + $0x10] sm:$0xff] %v501_v3  ;;  %510 = vst [vmem:[%s242_s7 + $0x18] sm:$0xff] %v502_v7 }
 0x326   : > { %507 = vst [vmem:[%s242_s7] sm:$0xff] %v499_v11  ;;  %508 = vst [vmem:[%s242_s7 + $0x8] sm:$0xff] %v500_v12 }
 0x327   : > { %v492_v13 = vpop.permute.xlu1 %491 }
 0x328   : > { %v503_v14 = vmul.f32 %v492_v13, %v987_v0  ;;  %v504_v8 = vmul.f32 %v492_v13, %v989_v1 }
 0x32a   : > { %511 = vst [vmem:[%s242_s7 + $0x20] sm:$0xff] %v503_v14  ;;  %512 = vst [vmem:[%s242_s7 + $0x28] sm:$0xff] %v504_v8 }
 0x32b   : > { %v497_v2 = vpop.permute.xlu1 %496 }
 0x32c   : > { %v505_v4 = vmul.f32 %v497_v2, %v997_v5  ;;  %v506_v0 = vmul.f32 %v497_v2, %v999_v6 }
 0x32e   : > { %513 = vst [vmem:[%s242_s7 + $0x30] sm:$0xff] %v505_v4  ;;  %514 = vst [vmem:[%s242_s7 + $0x38] sm:$0xff] %v506_v0 }
 0x32f   : > { %778 = shalt.err (!%p775_p2)
}
 0x330   : > { %s779_s12 = scalar_lea.hbm %s1055_s13, 1024  ;;  %s783_s16 = scalar_lea.hbm %s1106_s5, 2048 }
 0x331   : > { %p780_p4 = scmp.ne.s32.totalorder %s1055_s13, %s779_s12  ;;  %p784_p9 = scmp.lt.u32.totalorder %s1055_s13, %s1106_s5 }
 0x332   : > { %p785_p1 = scmp.lt.u32.totalorder %s783_s16, %s779_s12  ;;  %p787_p6 = scmp.lt.u32.totalorder %s779_s12, %s1055_s13 }
 0x333   : > { %p781_p5 = pnand %p780_p4, %p1113_p11 }
 0x334   : > { %p786_p3 = por %p785_p1, %p784_p9 }
 0x335   : > { %p782_p7 = pneg %p781_p5 }
 0x336   : > { %p788_p12 = por %p787_p6, %p786_p3 }
 0x338   : > { %p789_p13 = pnand %p788_p12, %p782_p7 }
 0x33a   : > { %792 = shalt.err (!%p789_p13)
}
 0x33b   : > { %s841_s10 = smov 256   ;;  %s842_s25 = smov 16  }
 0x33c   : > { %665 = dma.vmem_to_hbm [thread:$0]  (%p1113_p11), %s1050_s9, 1024, %s1055_s13, %s516_s22, %s841_s10, %s841_s10, %s842_s25  }
 0x33d PF: > { %s544_s11 = sand.u32 1, %s819_s18   ;;  %p1114_p8 = scmp.ne.s32.totalorder %s1111_s6, 0 }
 0x33e   : > { %p1115_p10 = scmp.ge.s32.totalorder %s831_s21, 2  ;;  %s545_s17 = scalar_lea.sflag [#allocation4], %s544_s11 }
 0x340   : > { %p672_p0 = pnand %p1115_p10, %p1114_p8 }
 0x342   : > { %814 = dma.done.wait (!%p672_p0), %s545_s17, 1024  }
 0x343   : > { %816 = vsyncadd (!%p672_p0), %s545_s17, 4294966272  ;;  %p18_p2 = scmp.ge.s32.totalorder %s898_s24, 4   ;;  %s1116_s18 = smov %s823_s19 }
 0x344   : > { %s1117_s19 = smov %s827_s20  ;;  %s1118_s20 = smov %s910_s27 }
 0x345   : > { %s1119_s21 = smov %s898_s24  ;;  %20 = sbr.rel (!%p18_p2) target bundleno = 5 (0x5), region = 85 }
 0x34c   :  { %550 = vsyncpa [#allocation3], 1 }
 0x34d   :  { %552 = vsyncpa [#allocation3 + $0x1], 1 }
 0x34e   :  { %553 = vsyncpa [#allocation4], 1 }
 0x34f   :  { %555 = vsyncpa [#allocation4 + $0x1], 1 }

</bundles_post_ra>
